<compile_context>
chip_gen: v7x
topology: tpu7x:2x2x1
jax: 0.10.0
libtpu: 0.0.40
codegen_flags: <defaults>
</compile_context>

<pallas_src>
import jax
import jax.numpy as jnp
from jax.experimental import pallas as pl
from jax.experimental.pallas import tpu as pltpu

EPS = 1e-5  # nn.BatchNorm2d default


# ----------------------------------------------------------------------------
# Kernels
# ----------------------------------------------------------------------------
def _conv_stats_kernel(cols_ref, wt_ref, b_ref, y_ref, sum_ref, sq_ref):
    # cols_ref: (25C, TILE_M) bf16 | wt_ref: (3C, 25C) bf16 | b_ref: (3C, 1) f32
    # One fused MXU matmul computes all three branch convolutions for the tile.
    y = jnp.dot(wt_ref[...], cols_ref[...], preferred_element_type=jnp.float32)
    y = y + b_ref[...]                       # (3C, TILE_M) + (3C, 1)
    y_ref[...] = y
    # Per-tile BatchNorm partial statistics (global reduction is finished in
    # the wrapper so the grid axis can stay "parallel").
    sum_ref[...] = jnp.sum(y, axis=-1, keepdims=True)[None]       # (1, 3C, 1)
    sq_ref[...] = jnp.sum(y * y, axis=-1, keepdims=True)[None]    # (1, 3C, 1)


def _bn_relu_conv_kernel(y_ref, scale_ref, shift_ref, wo_ref, bo_ref, o_ref):
    # y_ref: (3C, TILE_M) f32 | scale/shift: (3C, 1) f32
    # wo_ref: (C, 3C) bf16    | bo_ref: (C, 1) f32
    yn = jnp.maximum(y_ref[...] * scale_ref[...] + shift_ref[...], 0.0)
    out = jnp.dot(wo_ref[...], yn.astype(jnp.bfloat16),
                  preferred_element_type=jnp.float32)              # (C, TILE_M)
    o_ref[...] = (out + bo_ref[...]).astype(o_ref.dtype)


# ----------------------------------------------------------------------------
# Wrapper-side glue (layout plumbing only; all hot-path compute is in-kernel)
# ----------------------------------------------------------------------------
def _im2colT(x_nchw, k, pad):
    """Transposed im2col: rows = (dy*k+dx)*C + ci taps, cols = flattened pixels."""
    n, c, h, w = x_nchw.shape
    xp = jnp.pad(x_nchw, ((0, 0), (0, 0), (pad, pad), (pad, pad)))
    rows = []
    for dy in range(k):
        for dx in range(k):
            patch = xp[:, :, dy:dy + h, dx:dx + w]                 # (N,C,H,W)
            rows.append(jnp.transpose(patch, (1, 0, 2, 3)).reshape(c, n * h * w))
    return jnp.concatenate(rows, axis=0)                           # (k*k*C, M)


def _fuse_branch_weights(w1, w3, w5, c):
    """Pack the 1x1 / 3x3 / 5x5 branch weights into one (3C, 25C) matrix that
    multiplies the shared 5x5 im2col (tap order (dy*5+dx)*C + ci)."""
    wt = jnp.zeros((3 * c, 25 * c), jnp.float32)
    # 5x5 branch -> rows [2C, 3C), all 25 taps
    w5m = jnp.transpose(w5, (2, 3, 1, 0)).reshape(25 * c, c)       # ((kh*5+kw)*C+ci, co)
    wt = wt.at[2 * c:3 * c, :].set(w5m.T)
    # 3x3 branch -> rows [C, 2C), taps dy=kh+1, dx=kw+1
    for kh in range(3):
        for kw in range(3):
            col0 = ((kh + 1) * 5 + (kw + 1)) * c
            wt = wt.at[c:2 * c, col0:col0 + c].set(w3[:, :, kh, kw])
    # 1x1 branch -> rows [0, C), center tap (2, 2)
    col0 = (2 * 5 + 2) * c
    wt = wt.at[0:c, col0:col0 + c].set(w1[:, :, 0, 0])
    return wt


def _pick_tile_m(m, kc, c3, c, *, cap=1024, vmem_budget=24 << 20):
    """Largest multiple-of-128 divisor of M whose double-buffered working set
    fits the VMEM budget (valid on v5e/v6e/v7x scoped limits)."""
    best = None
    for t in range(128, min(cap, m) + 1, 128):
        if m % t:
            continue
        per_step = (2 * (kc * t * 2 + c3 * t * 4)        # pass 1: cols(bf16)+y(f32)
                    + 2 * (c3 * t * 4 + c * t * 4))      # pass 2: y + out
        if per_step <= vmem_budget:
            best = t
    return best if best is not None else m               # full-extent single tile


@jax.jit
def enhanced_feature_extraction(x_nchw, params):
    n, c, h, w = x_nchw.shape
    m = n * h * w
    c3, kc = 3 * c, 25 * c

    # Inputs for the kernels (bf16 for MXU operands, f32 for BN-affine terms).
    cols = _im2colT(x_nchw, 5, 2).astype(jnp.bfloat16)                   # (25C, M)
    wt = _fuse_branch_weights(params["w1"], params["w3"], params["w5"],
                              c).astype(jnp.bfloat16)                    # (3C, 25C)
    b = jnp.concatenate([params["b1"], params["b3"], params["b5"]]).reshape(c3, 1)
    gamma = params["gamma"].reshape(c3, 1)
    beta = params["beta"].reshape(c3, 1)
    wo = params["wo"].reshape(c, c3).astype(jnp.bfloat16)                # (C, 3C)
    bo = params["bo"].reshape(c, 1)

    tile_m = _pick_tile_m(m, kc, c3, c)
    n_tiles = m // tile_m
    cparams = pltpu.CompilerParams(dimension_semantics=("parallel",),
                                   vmem_limit_bytes=32 * 1024 * 1024)
    const = lambda i: (0, 0)  # weights / biases stay resident across the grid

    # ---- pass 1: fused branch convolutions + BN partial statistics ---------
    y, psum, psq = pl.pallas_call(
        _conv_stats_kernel,
        out_shape=(jax.ShapeDtypeStruct((c3, m), jnp.float32),
                   jax.ShapeDtypeStruct((n_tiles, c3, 1), jnp.float32),
                   jax.ShapeDtypeStruct((n_tiles, c3, 1), jnp.float32)),
        grid_spec=pltpu.PrefetchScalarGridSpec(
            num_scalar_prefetch=0, grid=(n_tiles,),
            in_specs=[pl.BlockSpec((kc, tile_m), lambda i: (0, i)),
                      pl.BlockSpec((c3, kc), const),
                      pl.BlockSpec((c3, 1), const)],
            out_specs=(pl.BlockSpec((c3, tile_m), lambda i: (0, i)),
                       pl.BlockSpec((1, c3, 1), lambda i: (i, 0, 0)),
                       pl.BlockSpec((1, c3, 1), lambda i: (i, 0, 0)))),
        compiler_params=cparams,
    )(cols, wt, b)

    # ---- tiny glue: finish the global BN reduction (single-pass variance) --
    mean = jnp.sum(psum, axis=0) / m                                     # (3C, 1)
    var = jnp.maximum(jnp.sum(psq, axis=0) / m - mean * mean, 0.0)
    scale = gamma * jax.lax.rsqrt(var + EPS)
    shift = beta - mean * scale

    # ---- pass 2: normalize + ReLU + fused 1x1 output conv ------------------
    out_t = pl.pallas_call(
        _bn_relu_conv_kernel,
        out_shape=jax.ShapeDtypeStruct((c, m), jnp.float32),
        grid_spec=pltpu.PrefetchScalarGridSpec(
            num_scalar_prefetch=0, grid=(n_tiles,),
            in_specs=[pl.BlockSpec((c3, tile_m), lambda i: (0, i)),
                      pl.BlockSpec((c3, 1), const),
                      pl.BlockSpec((c3, 1), const),
                      pl.BlockSpec((c, c3), const),
                      pl.BlockSpec((c, 1), const)],
            out_specs=pl.BlockSpec((c, tile_m), lambda i: (0, i))),
        compiler_params=cparams,
    )(y, scale, shift, wo, bo)

    return jnp.transpose(out_t.reshape(c, n, h, w), (1, 0, 2, 3))        # NCHW


# ----------------------------------------------------------------------------
# Pure-JAX reference (replica of the PyTorch forward, training-mode BN)
# ----------------------------------------------------------------------------
def _reference(x, p):
    def conv(x_, w_, b_, pad):
        y = jax.lax.conv_general_dilated(
            x_, w_, (1, 1), [(pad, pad), (pad, pad)],
            dimension_numbers=("NCHW", "OIHW", "NCHW"))
        return y + b_[None, :, None, None]

    x1 = conv(x, p["w1"], p["b1"], 0)
    x3 = conv(x, p["w3"], p["b3"], 1)
    x5 = conv(x, p["w5"], p["b5"], 2)
    xc = jnp.concatenate([x1, x3, x5], axis=1)
    mean = xc.mean(axis=(0, 2, 3), keepdims=True)
    var = ((xc - mean) ** 2).mean(axis=(0, 2, 3), keepdims=True)
    xn = (xc - mean) / jnp.sqrt(var + EPS)
    xn = xn * p["gamma"][None, :, None, None] + p["beta"][None, :, None, None]
    xr = jnp.maximum(xn, 0.0)
    return conv(xr, p["wo"], p["bo"], 0)


def _make_params(key, c):
    ks = jax.random.split(key, 10)
    s = 0.1
    return {
        "w1": s * jax.random.normal(ks[0], (c, c, 1, 1), jnp.float32),
        "b1": s * jax.random.normal(ks[1], (c,), jnp.float32),
        "w3": s * jax.random.normal(ks[2], (c, c, 3, 3), jnp.float32),
        "b3": s * jax.random.normal(ks[3], (c,), jnp.float32),
        "w5": s * jax.random.normal(ks[4], (c, c, 5, 5), jnp.float32),
        "b5": s * jax.random.normal(ks[5], (c,), jnp.float32),
        "gamma": 1.0 + s * jax.random.normal(ks[6], (3 * c,), jnp.float32),
        "beta": s * jax.random.normal(ks[7], (3 * c,), jnp.float32),
        "wo": s * jax.random.normal(ks[8], (c, 3 * c, 1, 1), jnp.float32),
        "bo": s * jax.random.normal(ks[9], (c,), jnp.float32),
    }


if __name__ == "__main__":
    key = jax.random.PRNGKey(0)
    # Second shape (M = 2048, TILE_M = 1024 -> 2 grid tiles) exercises the
    # multi-tile pipelined path and the cross-tile BatchNorm accumulation.
    for (N, C, H, W) in [(2, 4, 16, 16), (2, 4, 32, 32)]:
        kx, kp, key = jax.random.split(key, 3)
        x = jax.random.normal(kx, (N, C, H, W), jnp.float32)
        params = _make_params(kp, C)

        out = jax.block_until_ready(enhanced_feature_extraction(x, params))
        ref = jax.block_until_ready(_reference(x, params))

        assert out.shape == (N, C, H, W), out.shape
        err = float(jnp.max(jnp.abs(out - ref)))
        # Tolerance accounts for bf16 MXU operands (f32 accumulation / BN math).
        assert jnp.allclose(out, ref, atol=2e-2, rtol=2e-2), err

    print("KERNEL_OK")
</pallas_src>

<mosaic_0001>
module attributes {stable_mosaic.version = 11 : i64} {
  func.func @_conv_stats_kernel(%arg0: i32, %arg1: memref<100x512xbf16, #tpu.memory_space<vmem>>, %arg2: memref<12x100xbf16, #tpu.memory_space<vmem>>, %arg3: memref<12x1xf32, #tpu.memory_space<vmem>>, %arg4: memref<12x512xf32, #tpu.memory_space<vmem>>, %arg5: memref<1x12x1xf32, #tpu.memory_space<vmem>>, %arg6: memref<1x12x1xf32, #tpu.memory_space<vmem>>) attributes {dimension_semantics = [#tpu.dimension_semantics<parallel>], iteration_bounds = array<i64: 1>, scalar_prefetch = 0 : i64, scratch_operands = 0 : i64, tpu.core_type = #tpu.core_type<tc>, window_params = [{transform_indices = @transform_0, window_bounds = array<i64: 100, 512>}, {pipeline_mode = #tpu.pipeline_mode<synchronous>, transform_indices = @transform_1, window_bounds = array<i64: 12, 100>}, {pipeline_mode = #tpu.pipeline_mode<synchronous>, transform_indices = @transform_2, window_bounds = array<i64: 12, 1>}, {transform_indices = @transform_3, window_bounds = array<i64: 12, 512>}, {transform_indices = @transform_4, window_bounds = array<i64: 1, 12, 1>}, {transform_indices = @transform_5, window_bounds = array<i64: 1, 12, 1>}]} {
    %c0 = arith.constant 0 : index
    %c0_0 = arith.constant 0 : index
    %0 = vector.load %arg2[%c0, %c0_0] : memref<12x100xbf16, #tpu.memory_space<vmem>>, vector<12x100xbf16>
    %c0_1 = arith.constant 0 : index
    %c0_2 = arith.constant 0 : index
    %1 = vector.load %arg1[%c0_1, %c0_2] : memref<100x512xbf16, #tpu.memory_space<vmem>>, vector<100x512xbf16>
    %cst = arith.constant dense<0.000000e+00> : vector<12x512xf32>
    %2 = tpu.matmul %0, %1, %cst {dimension_numbers = #tpu.dot_dimension_numbers<[1], [0], [0], [1], [0, 0, 1, 1], [], []>} : vector<12x100xbf16>, vector<100x512xbf16>, vector<12x512xf32> -> vector<12x512xf32>
    %c0_3 = arith.constant 0 : index
    %c0_4 = arith.constant 0 : index
    %3 = vector.load %arg3[%c0_3, %c0_4] : memref<12x1xf32, #tpu.memory_space<vmem>>, vector<12x1xf32>
    %4 = vector.broadcast %3 : vector<12x1xf32> to vector<12x512xf32>
    %5 = arith.addf %2, %4 : vector<12x512xf32>
    %c0_5 = arith.constant 0 : index
    %c0_6 = arith.constant 0 : index
    %6 = vector.load %arg4[%c0_5, %c0_6] : memref<12x512xf32, #tpu.memory_space<vmem>>, vector<12x512xf32>
    tpu.vector_store %arg4[%c0_5, %c0_6], %5 {strides = array<i32>} : memref<12x512xf32, #tpu.memory_space<vmem>>, vector<12x512xf32>,
    %cst_7 = arith.constant dense<0.000000e+00> : vector<12xf32>
    %7 = vector.multi_reduction <add>, %5, %cst_7 [1] : vector<12x512xf32> to vector<12xf32>
    %8 = vector.shape_cast %7 : vector<12xf32> to vector<12x1xf32>
    %9 = vector.shape_cast %8 : vector<12x1xf32> to vector<1x12x1xf32>
    %c0_8 = arith.constant 0 : index
    %c0_9 = arith.constant 0 : index
    %c0_10 = arith.constant 0 : index
    %10 = vector.load %arg5[%c0_8, %c0_9, %c0_10] : memref<1x12x1xf32, #tpu.memory_space<vmem>>, vector<1x12x1xf32>
    tpu.vector_store %arg5[%c0_8, %c0_9, %c0_10], %9 {strides = array<i32>} : memref<1x12x1xf32, #tpu.memory_space<vmem>>, vector<1x12x1xf32>,
    %11 = arith.mulf %5, %5 : vector<12x512xf32>
    %cst_11 = arith.constant dense<0.000000e+00> : vector<12xf32>
    %12 = vector.multi_reduction <add>, %11, %cst_11 [1] : vector<12x512xf32> to vector<12xf32>
    %13 = vector.shape_cast %12 : vector<12xf32> to vector<12x1xf32>
    %14 = vector.shape_cast %13 : vector<12x1xf32> to vector<1x12x1xf32>
    %c0_12 = arith.constant 0 : index
    %c0_13 = arith.constant 0 : index
    %c0_14 = arith.constant 0 : index
    %15 = vector.load %arg6[%c0_12, %c0_13, %c0_14] : memref<1x12x1xf32, #tpu.memory_space<vmem>>, vector<1x12x1xf32>
    tpu.vector_store %arg6[%c0_12, %c0_13, %c0_14], %14 {strides = array<i32>} : memref<1x12x1xf32, #tpu.memory_space<vmem>>, vector<1x12x1xf32>,
    return
  }
  func.func @transform_0(%arg0: i32) -> (i32, i32) {
    %c0_i32 = arith.constant 0 : i32
    %c0_i32_0 = arith.constant 0 : i32
    return %c0_i32, %arg0 : i32, i32
  }
  func.func @transform_1(%arg0: i32) -> (i32, i32) {
    %c0_i32 = arith.constant 0 : i32
    %c0_i32_0 = arith.constant 0 : i32
    %c0_i32_1 = arith.constant 0 : i32
    return %c0_i32, %c0_i32_0 : i32, i32
  }
  func.func @transform_2(%arg0: i32) -> (i32, i32) {
    %c0_i32 = arith.constant 0 : i32
    %c0_i32_0 = arith.constant 0 : i32
    %c0_i32_1 = arith.constant 0 : i32
    return %c0_i32, %c0_i32_0 : i32, i32
  }
  func.func @transform_3(%arg0: i32) -> (i32, i32) {
    %c0_i32 = arith.constant 0 : i32
    %c0_i32_0 = arith.constant 0 : i32
    return %c0_i32, %arg0 : i32, i32
  }
  func.func @transform_4(%arg0: i32) -> (i32, i32, i32) {
    %c0_i32 = arith.constant 0 : i32
    %c0_i32_0 = arith.constant 0 : i32
    %c0_i32_1 = arith.constant 0 : i32
    return %arg0, %c0_i32, %c0_i32_0 : i32, i32, i32
  }
  func.func @transform_5(%arg0: i32) -> (i32, i32, i32) {
    %c0_i32 = arith.constant 0 : i32
    %c0_i32_0 = arith.constant 0 : i32
    %c0_i32_1 = arith.constant 0 : i32
    return %arg0, %c0_i32, %c0_i32_0 : i32, i32, i32
  }
}

module attributes {stable_mosaic.version = 11 : i64} {
  func.func @_bn_relu_conv_kernel(%arg0: i32, %arg1: memref<12x512xf32, #tpu.memory_space<vmem>>, %arg2: memref<12x1xf32, #tpu.memory_space<vmem>>, %arg3: memref<12x1xf32, #tpu.memory_space<vmem>>, %arg4: memref<4x12xbf16, #tpu.memory_space<vmem>>, %arg5: memref<4x1xf32, #tpu.memory_space<vmem>>, %arg6: memref<4x512xf32, #tpu.memory_space<vmem>>) attributes {dimension_semantics = [#tpu.dimension_semantics<parallel>], iteration_bounds = array<i64: 1>, scalar_prefetch = 0 : i64, scratch_operands = 0 : i64, tpu.core_type = #tpu.core_type<tc>, window_params = [{transform_indices = @transform_0, window_bounds = array<i64: 12, 512>}, {pipeline_mode = #tpu.pipeline_mode<synchronous>, transform_indices = @transform_1, window_bounds = array<i64: 12, 1>}, {pipeline_mode = #tpu.pipeline_mode<synchronous>, transform_indices = @transform_2, window_bounds = array<i64: 12, 1>}, {pipeline_mode = #tpu.pipeline_mode<synchronous>, transform_indices = @transform_3, window_bounds = array<i64: 4, 12>}, {pipeline_mode = #tpu.pipeline_mode<synchronous>, transform_indices = @transform_4, window_bounds = array<i64: 4, 1>}, {transform_indices = @transform_5, window_bounds = array<i64: 4, 512>}]} {
    %c0 = arith.constant 0 : index
    %c0_0 = arith.constant 0 : index
    %0 = vector.load %arg1[%c0, %c0_0] : memref<12x512xf32, #tpu.memory_space<vmem>>, vector<12x512xf32>
    %c0_1 = arith.constant 0 : index
    %c0_2 = arith.constant 0 : index
    %1 = vector.load %arg2[%c0_1, %c0_2] : memref<12x1xf32, #tpu.memory_space<vmem>>, vector<12x1xf32>
    %2 = vector.broadcast %1 : vector<12x1xf32> to vector<12x512xf32>
    %3 = arith.mulf %0, %2 : vector<12x512xf32>
    %c0_3 = arith.constant 0 : index
    %c0_4 = arith.constant 0 : index
    %4 = vector.load %arg3[%c0_3, %c0_4] : memref<12x1xf32, #tpu.memory_space<vmem>>, vector<12x1xf32>
    %5 = vector.broadcast %4 : vector<12x1xf32> to vector<12x512xf32>
    %6 = arith.addf %3, %5 : vector<12x512xf32>
    %cst = arith.constant 0.000000e+00 : f32
    %7 = vector.broadcast %cst : f32 to vector<12x512xf32>
    %8 = arith.maximumf %6, %7 : vector<12x512xf32>
    %c0_5 = arith.constant 0 : index
    %c0_6 = arith.constant 0 : index
    %9 = vector.load %arg4[%c0_5, %c0_6] : memref<4x12xbf16, #tpu.memory_space<vmem>>, vector<4x12xbf16>
    %10 = arith.truncf %8 : vector<12x512xf32> to vector<12x512xbf16>
    %cst_7 = arith.constant dense<0.000000e+00> : vector<4x512xf32>
    %11 = tpu.matmul %9, %10, %cst_7 {dimension_numbers = #tpu.dot_dimension_numbers<[1], [0], [0], [1], [0, 0, 1, 1], [], []>} : vector<4x12xbf16>, vector<12x512xbf16>, vector<4x512xf32> -> vector<4x512xf32>
    %c0_8 = arith.constant 0 : index
    %c0_9 = arith.constant 0 : index
    %12 = vector.load %arg5[%c0_8, %c0_9] : memref<4x1xf32, #tpu.memory_space<vmem>>, vector<4x1xf32>
    %13 = vector.broadcast %12 : vector<4x1xf32> to vector<4x512xf32>
    %14 = arith.addf %11, %13 : vector<4x512xf32>
    %c0_10 = arith.constant 0 : index
    %c0_11 = arith.constant 0 : index
    %15 = vector.load %arg6[%c0_10, %c0_11] : memref<4x512xf32, #tpu.memory_space<vmem>>, vector<4x512xf32>
    tpu.vector_store %arg6[%c0_10, %c0_11], %14 {strides = array<i32>} : memref<4x512xf32, #tpu.memory_space<vmem>>, vector<4x512xf32>,
    return
  }
  func.func @transform_0(%arg0: i32) -> (i32, i32) {
    %c0_i32 = arith.constant 0 : i32
    %c0_i32_0 = arith.constant 0 : i32
    return %c0_i32, %arg0 : i32, i32
  }
  func.func @transform_1(%arg0: i32) -> (i32, i32) {
    %c0_i32 = arith.constant 0 : i32
    %c0_i32_0 = arith.constant 0 : i32
    %c0_i32_1 = arith.constant 0 : i32
    return %c0_i32, %c0_i32_0 : i32, i32
  }
  func.func @transform_2(%arg0: i32) -> (i32, i32) {
    %c0_i32 = arith.constant 0 : i32
    %c0_i32_0 = arith.constant 0 : i32
    %c0_i32_1 = arith.constant 0 : i32
    return %c0_i32, %c0_i32_0 : i32, i32
  }
  func.func @transform_3(%arg0: i32) -> (i32, i32) {
    %c0_i32 = arith.constant 0 : i32
    %c0_i32_0 = arith.constant 0 : i32
    %c0_i32_1 = arith.constant 0 : i32
    return %c0_i32, %c0_i32_0 : i32, i32
  }
  func.func @transform_4(%arg0: i32) -> (i32, i32) {
    %c0_i32 = arith.constant 0 : i32
    %c0_i32_0 = arith.constant 0 : i32
    %c0_i32_1 = arith.constant 0 : i32
    return %c0_i32, %c0_i32_0 : i32, i32
  }
  func.func @transform_5(%arg0: i32) -> (i32, i32) {
    %c0_i32 = arith.constant 0 : i32
    %c0_i32_0 = arith.constant 0 : i32
    return %c0_i32, %arg0 : i32, i32
  }
}

</mosaic_0001>

<bundles_post_ra>
// kernel: enhanced_feature_extraction.3
= control target key start
LH: loop header
LB: loop body
LE: loop exit
PB: predicated region body
PF: predicated region fallthrough
CT: control target
= control target key end

     0   :  { %v208_v0 = vmov 0   ;;  %vm92_vm0 = vcmask 1045504   ;;  %vm88_vm1 = vcmask 97280   ;;  %s287_s2 = inlined_call_operand.vmem [shape: f32[12,1], index: 2, kind: input, shape index: {}]   ;;  %s288_s1 = inlined_call_operand.vmem [shape: f32[12,1], index: 1, kind: input, shape index: {}]   ;;  %s289_s4 = inlined_call_operand.vmem [shape: f32[4,1], index: 4, kind: input, shape index: {}]   ;;  %s290_s0 = inlined_call_operand.vmem [shape: f32[12,512], index: 0, kind: input, shape index: {}]   ;;  %s291_s3 = inlined_call_operand.vmem [shape: bf16[4,12], index: 3, kind: input, shape index: {}]   ;;  %s292_s5 = inlined_call_operand.vmem [shape: f32[4,512], index: 5, kind: output, shape index: {}]  }
   0x1   :  { %207 = vset.pattern.permute.xlu1 %v208_v0  ;;  %206 = vset.pattern.permute.xlu0 %v208_v0  ;;  %v49_v1 = vld [vmem:[%s287_s2] sm:$0xff]  ;;  %v50_v3 = vld [vmem:[%s287_s2 + $0x8] sm:$0xf]  ;;  %v23_v8 = vld [vmem:[%s290_s0 + $0x10] sm:$0xff] }
   0x2   :  { %v29_v2 = vld [vmem:[%s288_s1] sm:$0xff]  ;;  %53 = vperm.xlu1 %207, %v49_v1   ;;  %v30_v4 = vld [vmem:[%s288_s1 + $0x8] sm:$0xf]  ;;  %137 = vmatprep.mubr.bf16.mxu0 %v208_v0  ;;  %v24_v9 = vld [vmem:[%s290_s0 + $0x18] sm:$0xff] }
   0x3   :  { %33 = vperm.xlu0 %206, %v29_v2   ;;  %178 = vmatprep.mubr.bf16.mxu1 %v208_v0  ;;  %v82_v5 = vld [vmem:[%s289_s4] sm:$0xf]  ;;  %v22_v7 = vld [vmem:[%s290_s0 + $0x8] sm:$0xff]  ;;  %v27_v18 = vld [vmem:[%s290_s0 + $0x30] sm:$0xf] }
   0x4   :  { %v21_v6 = vld [vmem:[%s290_s0] sm:$0xff]  ;;  %v26_v17 = vld [vmem:[%s290_s0 + $0x28] sm:$0xf]  ;;  %v28_v19 = vld [vmem:[%s290_s0 + $0x38] sm:$0xf] }
   0x5   :  { %v25_v16 = vld [vmem:[%s290_s0 + $0x20] sm:$0xf] }
   0x6   :  { %58 = vperm.xlu1 %207, %v50_v3   ;;  %v77_v48 = vld [vmem:[%s291_s3] sm:$0x3] }
   0x7   :  { %38 = vperm.xlu0 %206, %v30_v4  }
   0xb   :  { %85 = vperm.xlu0 %206, %v82_v5  }
  0x81   :  { %v54_v10 = vpop.permute.xlu1 %53 }
  0x82   :  { %v34_v11 = vpop.permute.xlu0 %33 }
  0x83   :  { %v41_v12 = vmul.f32 %v34_v11, %v21_v6  ;;  %v42_v13 = vmul.f32 %v34_v11, %v22_v7  ;;  %v43_v14 = vmul.f32 %v34_v11, %v23_v8  ;;  %v44_v15 = vmul.f32 %v34_v11, %v24_v9 }
  0x85   :  { %v62_v21 = vadd.f32 %v54_v10, %v42_v13  ;;  %v64_v22 = vadd.f32 %v54_v10, %v44_v15  ;;  %v61_v23 = vadd.f32 %v54_v10, %v41_v12  ;;  %v63_v24 = vadd.f32 %v54_v10, %v43_v14  ;;  %v59_v29 = vpop.permute.xlu1 %58 }
  0x86   :  { %v39_v20 = vpop.permute.xlu0 %38 }
  0x87   :  { %v45_v25 = vmul.f32 %v39_v20, %v25_v16  ;;  %v46_v26 = vmul.f32 %v39_v20, %v26_v17  ;;  %v47_v27 = vmul.f32 %v39_v20, %v27_v18  ;;  %v48_v28 = vmul.f32 %v39_v20, %v28_v19 }
  0x88   :  { %v70_v34 = vmax.f32 %v62_v21, 0.0  ;;  %v72_v35 = vmax.f32 %v64_v22, 0.0  ;;  %v69_v36 = vmax.f32 %v61_v23, 0.0  ;;  %v71_v37 = vmax.f32 %v63_v24, 0.0 }
  0x89   :  { %v66_v30 = vadd.f32 %v59_v29, %v46_v26  ;;  %v68_v31 = vadd.f32 %v59_v29, %v48_v28  ;;  %v65_v32 = vadd.f32 %v59_v29, %v45_v25  ;;  %v67_v33 = vadd.f32 %v59_v29, %v47_v27 }
  0x8a   :  { %v86_v49 = vpop.permute.xlu0 %85 }
  0x8b   :  { %v74_v38 = vmax.f32 %v66_v30, 0.0  ;;  %v76_v39 = vmax.f32 %v68_v31, 0.0  ;;  %v73_v40 = vmax.f32 %v65_v32, 0.0  ;;  %v75_v41 = vmax.f32 %v67_v33, 0.0 }
  0x8d   :  { %v79_v42 = vpack.c.bf16 %v74_v38, %v70_v34  ;;  %v81_v43 = vpack.c.bf16 %v76_v39, %v72_v35  ;;  %v78_v44 = vpack.c.bf16 %v73_v40, %v69_v36  ;;  %v80_v45 = vpack.c.bf16 %v75_v41, %v71_v37 }
  0x8f   :  { %201 = vmatprep.subr.msk.bf16.mxu0 %vm92_vm0, %v79_v42  ;;  %203 = vmatprep.subr.msk.bf16.mxu1 %vm92_vm0, %v81_v43  ;;  %v94_v46 = vsel %vm92_vm0, %v78_v44, 0  ;;  %v100_v47 = vsel %vm92_vm0, %v80_v45, 0 }
  0x90   :  { %106 = vmatpush1.bf16.msra.mxu0 %v94_v46  ;;  %147 = vmatpush1.bf16.msra.mxu1 %v100_v47 }
  0x93   :  { %202 = vmatmul.mubr.msk.bf16.vlgmr.msra.gmra.mrb[0].mxu0 %vm88_vm1, %v77_v48  ;;  %204 = vmatmul.mubr.msk.bf16.vlgmr.msra.gmra.mrb[0].mxu1 %vm88_vm1, %v77_v48 }
 0x166   :  { %v139_v50 = vpop.f32.mrb[0].mxu0  ;;  %v180_v51 = vpop.f32.mrb[0].mxu1 }
 0x167   :  { %v140_v52 = vadd.f32 %v139_v50, %v86_v49  ;;  %v181_v53 = vadd.f32 %v180_v51, %v86_v49  ;;  %v141_v54 = vpop.f32.mrb[1].mxu0  ;;  %v182_v55 = vpop.f32.mrb[1].mxu1 }
 0x168   :  { %v142_v56 = vadd.f32 %v141_v54, %v86_v49  ;;  %v183_v57 = vadd.f32 %v182_v55, %v86_v49  ;;  %v143_v58 = vpop.f32.mrb[2].mxu0  ;;  %v184_v59 = vpop.f32.mrb[2].mxu1 }
 0x169   :  { %v144_v60 = vpop.f32.mrb[3].mxu0  ;;  %v185_v61 = vpop.f32.mrb[3].mxu1 }
 0x16a   :  { %v191_v62 = vcombine.low %v140_v52, %v142_v56  ;;  %v192_v63 = vcombine.low %v181_v53, %v183_v57 }
 0x16c   :  { %195 = vst [vmem:[%s292_s5] sm:$0xff] %v191_v62  ;;  %196 = vst [vmem:[%s292_s5 + $0x8] sm:$0xff] %v192_v63 }

// kernel: enhanced_feature_extraction.2
= control target key start
LH: loop header
LB: loop body
LE: loop exit
PB: predicated region body
PF: predicated region fallthrough
CT: control target
= control target key end

     0   :  { %v435_v1 = vmov 0   ;;  %vm197_vm0 = vcmask 1041408   ;;  %vm193_vm1 = vcmask 818176   ;;  %vm309_vm2 = vcmask 1043456   ;;  %s597_s0 = inlined_call_operand.vmem [shape: bf16[100,512], index: 0, kind: input, shape index: {}]   ;;  %s598_s2 = inlined_call_operand.vmem [shape: f32[12,1], index: 2, kind: input, shape index: {}]   ;;  %s599_s1 = inlined_call_operand.vmem [shape: bf16[12,100], index: 1, kind: input, shape index: {}]   ;;  %s600_s3 = inlined_call_operand.vmem [shape: f32[12,512], index: 3, kind: output, shape index: {0}]   ;;  %s601_s4 = inlined_call_operand.vmem [shape: f32[1,12,1], index: 4, kind: output, shape index: {1}]   ;;  %s602_s5 = inlined_call_operand.vmem [shape: f32[1,12,1], index: 5, kind: output, shape index: {2}]  }
   0x1   :  { %v394_v0 = vld [vmem:[%s597_s0 + $0x4] ss:$16 sps:$4 sm:$0xff]   ;;  %242 = vmatprep.mubr.bf16.mxu0 %v435_v1  ;;  %285 = vmatprep.mubr.bf16.mxu1 %v435_v1  ;;  %v396_v2 = vld [vmem:[%s597_s0 + $0xc] ss:$16 sps:$4 sm:$0xff]   ;;  %v398_v3 = vld [vmem:[%s597_s0] ss:$16 sps:$4 sm:$0xff]  }
   0x2   :  { %393 = vset.pattern.permute.xlu0 %v435_v1  ;;  %210 = vmatprep.subr.bf16.mxu0 %v394_v0  ;;  %v399_v4 = vld [vmem:[%s597_s0 + $0x8] ss:$16 sps:$4 sm:$0xff]   ;;  %v400_v5 = vld [vmem:[%s597_s0 + $0x24] ss:$16 sps:$4 sm:$0xff]   ;;  %v402_v6 = vld [vmem:[%s597_s0 + $0x2c] ss:$16 sps:$4 sm:$0xff]  }
   0x3   :  { %253 = vmatprep.subr.bf16.mxu1 %v396_v2  ;;  %211 = vmatpush1.bf16.msra.mxu0 %v398_v3  ;;  %v404_v7 = vld [vmem:[%s597_s0 + $0x20] ss:$16 sps:$4 sm:$0xff]   ;;  %v405_v8 = vld [vmem:[%s597_s0 + $0x28] ss:$16 sps:$4 sm:$0xff]   ;;  %v406_v9 = vld [vmem:[%s597_s0 + $0x44] ss:$16 sps:$4 sm:$0xff]  }
   0x4   :  { %254 = vmatpush1.bf16.msra.mxu1 %v399_v4  ;;  %212 = vmatprep.subr.bf16.mxu0 %v400_v5  ;;  %v408_v10 = vld [vmem:[%s597_s0 + $0x4c] ss:$16 sps:$4 sm:$0xff]   ;;  %v410_v11 = vld [vmem:[%s597_s0 + $0x40] ss:$16 sps:$4 sm:$0xff]   ;;  %v411_v12 = vld [vmem:[%s597_s0 + $0x48] ss:$16 sps:$4 sm:$0xff]  }
   0x5   :  { %255 = vmatprep.subr.bf16.mxu1 %v402_v6  ;;  %v412_v13 = vld [vmem:[%s597_s0 + $0x64] ss:$16 sps:$4 sm:$0xff]   ;;  %v414_v14 = vld [vmem:[%s597_s0 + $0x6c] ss:$16 sps:$4 sm:$0xff]   ;;  %v416_v15 = vld [vmem:[%s597_s0 + $0x60] ss:$16 sps:$4 sm:$0xff]  }
   0x6   :  { %v417_v16 = vld [vmem:[%s597_s0 + $0x68] ss:$16 sps:$4 sm:$0xff]   ;;  %v418_v17 = vld [vmem:[%s597_s0 + $0x84] ss:$16 sps:$4 sm:$0xff]   ;;  %v420_v18 = vld [vmem:[%s597_s0 + $0x8c] ss:$16 sps:$4 sm:$0xff]  }
   0x7   :  { %213 = vmatpush1.bf16.msra.mxu0 %v404_v7  ;;  %v422_v19 = vld [vmem:[%s597_s0 + $0x80] ss:$16 sps:$4 sm:$0xff]   ;;  %v423_v20 = vld [vmem:[%s597_s0 + $0x88] ss:$16 sps:$4 sm:$0xff]   ;;  %v424_v21 = vld [vmem:[%s597_s0 + $0xa4] ss:$16 sps:$4 sm:$0xff]  }
   0x8   :  { %256 = vmatpush1.bf16.msra.mxu1 %v405_v8  ;;  %214 = vmatprep.subr.bf16.mxu0 %v406_v9  ;;  %v426_v22 = vld [vmem:[%s597_s0 + $0xac] ss:$16 sps:$4 sm:$0xff]   ;;  %v44_v23 = vld [vmem:[%s597_s0 + $0xc0] sm:$0x33]  ;;  %v47_v24 = vld [vmem:[%s598_s2 + $0x8] sm:$0xf] }
   0x9   :  { %257 = vmatprep.subr.bf16.mxu1 %v408_v10  ;;  %v45_v25 = vld [vmem:[%s597_s0 + $0xc8] sm:$0x33]  ;;  %55 = vperm.xlu0 %393, %v47_v24   ;;  %v46_v26 = vld [vmem:[%s598_s2] sm:$0xff]  ;;  %v385_v29 = vcombine.high %v44_v23, %v44_v23  ;;  %v384_v31 = vcombine.low %v44_v23, %v44_v23  ;;  %vm319_vm3 = vcmask 7168   ;;  %vm321_vm4 = vcmask 3072  }
   0xa   :  { %v428_v27 = vld [vmem:[%s597_s0 + $0xa0] ss:$16 sps:$4 sm:$0xff]   ;;  %v429_v28 = vld [vmem:[%s597_s0 + $0xa8] ss:$16 sps:$4 sm:$0xff]   ;;  %v387_v30 = vcombine.high %v45_v25, %v45_v25  ;;  %v386_v32 = vcombine.low %v45_v25, %v45_v25 }
   0xb   :  { %215 = vmatpush1.bf16.msra.mxu0 %v410_v11  ;;  %v199_v33 = vsel %vm197_vm0, %v384_v31, 0  ;;  %v434_v35 = vld [vmem:[%s599_s1] sm:$0x3f]  }
   0xc   :  { %258 = vmatpush1.bf16.msra.mxu1 %v411_v12  ;;  %216 = vmatprep.subr.bf16.mxu0 %v412_v13  ;;  %v205_v34 = vsel %vm197_vm0, %v386_v32, 0 }
   0xd   :  { %259 = vmatprep.subr.bf16.mxu1 %v414_v14  ;;  %50 = vperm.xlu0 %393, %v46_v26  }
   0xf   :  { %217 = vmatpush1.bf16.msra.mxu0 %v416_v15 }
  0x10   :  { %260 = vmatpush1.bf16.msra.mxu1 %v417_v16  ;;  %218 = vmatprep.subr.bf16.mxu0 %v418_v17 }
  0x11   :  { %261 = vmatprep.subr.bf16.mxu1 %v420_v18 }
  0x13   :  { %219 = vmatpush1.bf16.msra.mxu0 %v422_v19 }
  0x14   :  { %262 = vmatpush1.bf16.msra.mxu1 %v423_v20  ;;  %220 = vmatprep.subr.bf16.mxu0 %v424_v21 }
  0x15   :  { %263 = vmatprep.subr.bf16.mxu1 %v426_v22 }
  0x17   :  { %221 = vmatpush1.bf16.msra.mxu0 %v428_v27 }
  0x18   :  { %264 = vmatpush1.bf16.msra.mxu1 %v429_v28  ;;  %388 = vmatprep.subr.msk.bf16.mxu0 %vm197_vm0, %v385_v29 }
  0x19   :  { %390 = vmatprep.subr.msk.bf16.mxu1 %vm197_vm0, %v387_v30 }
  0x1b   :  { %223 = vmatpush1.bf16.msra.mxu0 %v199_v33 }
  0x1c   :  { %266 = vmatpush1.bf16.msra.mxu1 %v205_v34 }
  0x1e   :  { %389 = vmatmul.mubr.msk.bf16.vlgmr.msra.gmra.mrb[0].mxu0 %vm193_vm1, %v434_v35 }
  0x1f   :  { %391 = vmatmul.mubr.msk.bf16.vlgmr.msra.gmra.mrb[0].mxu1 %vm193_vm1, %v434_v35 }
  0x88   :  { %v56_v36 = vpop.permute.xlu0 %55 }
  0x8c   :  { %v51_v37 = vpop.permute.xlu0 %50 }
  0xf1   :  { %v244_v38 = vpop.f32.mrb[0].mxu0 }
  0xf2   :  { %v287_v39 = vpop.f32.mrb[0].mxu1  ;;  %v245_v40 = vadd.f32 %v244_v38, %v51_v37  ;;  %v246_v42 = vpop.f32.mrb[1].mxu0 }
  0xf3   :  { %v288_v41 = vadd.f32 %v287_v39, %v51_v37  ;;  %v289_v43 = vpop.f32.mrb[1].mxu1  ;;  %v247_v44 = vadd.f32 %v246_v42, %v51_v37  ;;  %v248_v46 = vpop.f32.mrb[2].mxu0 }
  0xf4   :  { %v290_v45 = vadd.f32 %v289_v43, %v51_v37  ;;  %v291_v47 = vpop.f32.mrb[2].mxu1  ;;  %296 = vst [vmem:[%s600_s3] sm:$0xff] %v245_v40  ;;  %v323_v48 = vmul.f32 %v245_v40, %v245_v40  ;;  %v249_v49 = vadd.f32 %v248_v46, %v56_v36  ;;  %v250_v51 = vpop.f32.mrb[3].mxu0 }
  0xf5   :  { %298 = vst [vmem:[%s600_s3 + $0x10] sm:$0xff] %v288_v41  ;;  %v292_v50 = vadd.f32 %v291_v47, %v56_v36  ;;  %v293_v52 = vpop.f32.mrb[3].mxu1  ;;  %297 = vst [vmem:[%s600_s3 + $0x8] sm:$0xff] %v247_v44  ;;  %v324_v53 = vmul.f32 %v247_v44, %v247_v44  ;;  %v251_v54 = vadd.f32 %v250_v51, %v56_v36 }
  0xf6   :  { %299 = vst [vmem:[%s600_s3 + $0x18] sm:$0xff] %v290_v45  ;;  %v294_v55 = vadd.f32 %v293_v52, %v56_v36  ;;  %v304_v56 = vadd.f32 %v247_v44, %v245_v40  ;;  %v325_v57 = vmul.f32 %v288_v41, %v288_v41  ;;  %300 = vst [vmem:[%s600_s3 + $0x20] sm:$0xf] %v249_v49  ;;  %v310_v58 = vsel %vm309_vm2, %v249_v49, 0.0 }
  0xf7   :  { %v327_v59 = vmul.f32 %v249_v49, %v249_v49  ;;  %302 = vst [vmem:[%s600_s3 + $0x30] sm:$0xf] %v292_v50  ;;  %v329_v60 = vmul.f32 %v292_v50, %v292_v50  ;;  %301 = vst [vmem:[%s600_s3 + $0x28] sm:$0xf] %v251_v54  ;;  %v311_v61 = vsel %vm309_vm2, %v251_v54, 0.0  ;;  %v328_v62 = vmul.f32 %v251_v54, %v251_v54 }
  0xf8   :  { %303 = vst [vmem:[%s600_s3 + $0x38] sm:$0xf] %v294_v55  ;;  %v305_v63 = vadd.f32 %v304_v56, %v288_v41  ;;  %v331_v0 = vadd.f32 %v324_v53, %v323_v48  ;;  %v326_v1 = vmul.f32 %v290_v45, %v290_v45  ;;  %v312_v2 = vadd.f32 %v311_v61, %v310_v58 }
  0xf9   :  { %v313_v3 = vsel %vm309_vm2, %v292_v50, 0.0  ;;  %v330_v4 = vmul.f32 %v294_v55, %v294_v55  ;;  %v336_v7 = vsel %vm309_vm2, %v327_v59, 0.0  ;;  %v337_v8 = vsel %vm309_vm2, %v328_v62, 0.0 }
  0xfa   :  { %v306_v5 = vadd.f32 %v305_v63, %v290_v45  ;;  %v332_v6 = vadd.f32 %v331_v0, %v325_v57  ;;  %v314_v9 = vadd.f32 %v313_v3, %v312_v2  ;;  %v338_v10 = vadd.f32 %v337_v8, %v336_v7 }
  0xfb   :  { %v315_v12 = vsel %vm309_vm2, %v294_v55, 0.0  ;;  %v339_v13 = vsel %vm309_vm2, %v329_v60, 0.0  ;;  %v341_v16 = vsel %vm309_vm2, %v330_v4, 0.0 }
  0xfc   :  { %307 = vadd.xlane.f32.xlu1 %v306_v5  ;;  %v333_v11 = vadd.f32 %v332_v6, %v326_v1  ;;  %v316_v14 = vadd.f32 %v315_v12, %v314_v9  ;;  %v340_v15 = vadd.f32 %v339_v13, %v338_v10 }
  0xfe   :  { %334 = vadd.xlane.f32.xlu0 %v333_v11  ;;  %v342_v17 = vadd.f32 %v341_v16, %v340_v15 }
 0x100   :  { %317 = vadd.xlane.f32.xlu1 %v316_v14 }
 0x104   :  { %343 = vadd.xlane.f32.xlu1 %v342_v17 }
 0x189   :  { %v308_v18 = vpop.xlane.xlu1 %307 }
 0x18a   :  { %320 = vst.msk [vmem:[%s601_s4] sm:$0xff] %vm319_vm3, %v308_v18 }
 0x18b   :  { %v335_v19 = vpop.xlane.xlu0 %334 }
 0x18c   :  { %345 = vst.msk [vmem:[%s602_s5] sm:$0xff] %vm319_vm3, %v335_v19 }
 0x18d   :  { %v318_v20 = vpop.xlane.xlu1 %317 }
 0x18e   :  { %322 = vst.msk [vmem:[%s601_s4 + $0x8] sm:$0xf] %vm321_vm4, %v318_v20 }
 0x191   :  { %v344_v21 = vpop.xlane.xlu1 %343 }
 0x192   :  { %346 = vst.msk [vmem:[%s602_s5 + $0x8] sm:$0xf] %vm321_vm4, %v344_v21 }

</bundles_post_ra>
